<compile_context>
chip_gen: v5e
topology: v5e:2x2
jax: 0.10.0
libtpu: 0.0.40
codegen_flags: <defaults>
</compile_context>

<pallas_src>
import functools

import jax
import jax.numpy as jnp
from jax.experimental import pallas as pl
from jax.experimental.pallas import tpu as pltpu

LANE = 128          # TPU lane width; everything is padded to this in the last dim
NUM_CLASSES = 4     # the .view(-1, 4) in the reference model


# ----------------------------- Pallas kernels ------------------------------

def fused_mlp_ce_kernel(x_ref, w1_ref, b1_ref, w2_ref, b2_ref,
                        labels_ref, wt_ref, logits_ref, loss_ref):
    """relu(x @ W1 + b1) @ W2 + b2 plus weighted cross-entropy, in one kernel.

    All operands are pre-padded to 128 lanes, so both matmuls are dense MXU
    passes and the logits store is an unmasked 128-wide vst.
    """
    h = jnp.dot(x_ref[...], w1_ref[...], preferred_element_type=jnp.float32)
    h = jnp.maximum(h + b1_ref[...], 0.0)
    logits = jnp.dot(h, w2_ref[...], preferred_element_type=jnp.float32) + b2_ref[...]
    logits_ref[...] = logits.astype(logits_ref.dtype)          # lane-dense (B,128) store

    # Weighted CE, reduction='mean': sum_i wt[y_i] * nll_i / sum_i wt[y_i]
    # With h == 4 the reshape(-1, 4) is a no-op view, so CE runs on the first
    # NUM_CLASSES columns; padded columns are masked out of the softmax.
    n, p = logits.shape
    col = jax.lax.broadcasted_iota(jnp.int32, (n, p), 1)
    masked = jnp.where(col < NUM_CLASSES, logits, jnp.float32(-1e30))
    m = jnp.max(masked, axis=-1, keepdims=True)
    z = masked - m
    lse = jnp.log(jnp.sum(jnp.exp(z), axis=-1, keepdims=True))
    logp = z - lse                                              # (N,128)

    onehot = (col == labels_ref[...]).astype(jnp.float32)       # (N,128)
    picked = jnp.sum(logp * onehot, axis=-1, keepdims=True)     # (N,1): logp[i, y_i]
    w_per = jnp.sum(wt_ref[...] * onehot, axis=-1, keepdims=True)  # (N,1): wt[y_i]

    num = jnp.sum(-picked * w_per, keepdims=True)               # (1,1)
    den = jnp.sum(w_per, keepdims=True)                         # (1,1)
    inv = pl.reciprocal(den, approx=True)                       # EUP slot (free)
    inv = inv * (2.0 - den * inv)                               # one Newton step for accuracy
    loss_ref[0, 0] = jnp.sum(num * inv)


def mlp_kernel(x_ref, w1_ref, b1_ref, w2_ref, b2_ref, logits_ref):
    # labels is None path: logits only, still a single call.
    h = jnp.dot(x_ref[...], w1_ref[...], preferred_element_type=jnp.float32)
    h = jnp.maximum(h + b1_ref[...], 0.0)
    out = jnp.dot(h, w2_ref[...], preferred_element_type=jnp.float32) + b2_ref[...]
    logits_ref[...] = out.astype(logits_ref.dtype)


# ----------------------------- Python wrappers ------------------------------

_VSPEC = pl.BlockSpec(memory_space=pltpu.MemorySpace.VMEM)
_SSPEC = pl.BlockSpec(memory_space=pltpu.MemorySpace.SMEM)


def _pad2(a, rows, cols):
    r, c = a.shape
    return jnp.pad(a, ((0, rows - r), (0, cols - c)))


def prepare_params(w1, b1, w2, b2):
    """Zero-pad weights/biases to lane-dense 128-wide slabs, once at init.

    Weights are stored (in_features, out_features), i.e. already transposed vs
    PyTorch's (out, in), so the kernel computes x @ W directly.
    """
    return {
        "w1p": _pad2(w1.astype(jnp.float32), LANE, LANE),              # (128,128)
        "b1p": _pad2(b1.astype(jnp.float32).reshape(1, -1), 1, LANE),  # (1,128)
        "w2p": _pad2(w2.astype(jnp.float32), LANE, LANE),              # (128,128)
        "b2p": _pad2(b2.astype(jnp.float32).reshape(1, -1), 1, LANE),  # (1,128)
    }


@functools.partial(jax.jit, static_argnames=("h",))
def _forward_with_loss(params, feature, labels, wt, h):
    b, in_dim = feature.shape
    x = jnp.pad(feature.astype(jnp.float32), ((0, 0), (0, LANE - in_dim)))
    labels_b = jnp.broadcast_to(labels.astype(jnp.int32).reshape(-1, 1), (b, LANE))
    wt_p = jnp.pad(wt.astype(jnp.float32).reshape(1, -1),
                   ((0, 0), (0, LANE - NUM_CLASSES)))
    logits_pad, loss = pl.pallas_call(
        fused_mlp_ce_kernel,
        out_shape=(jax.ShapeDtypeStruct((b, LANE), jnp.float32),
                   jax.ShapeDtypeStruct((1, 1), jnp.float32)),
        in_specs=[_VSPEC] * 7,
        out_specs=(_VSPEC, _SSPEC),
    )(x, params["w1p"], params["b1p"], params["w2p"], params["b2p"],
      labels_b, wt_p)
    return loss[0, 0], logits_pad[:, :h]


@functools.partial(jax.jit, static_argnames=("h",))
def _forward_logits(params, feature, h):
    b, in_dim = feature.shape
    x = jnp.pad(feature.astype(jnp.float32), ((0, 0), (0, LANE - in_dim)))
    logits_pad = pl.pallas_call(
        mlp_kernel,
        out_shape=jax.ShapeDtypeStruct((b, LANE), jnp.float32),
        in_specs=[_VSPEC] * 5,
        out_specs=_VSPEC,
    )(x, params["w1p"], params["b1p"], params["w2p"], params["b2p"])
    return logits_pad[:, :h]


def model_forward(params, feature, labels=None, wt=None, h=NUM_CLASSES):
    """Mirrors Model.forward: returns (loss, logits); loss == 0 when labels is None."""
    if labels is None:
        return 0.0, _forward_logits(params, feature, h)
    # TODO(synk): the fused CE assumes h == 4 so logits.view(-1, 4) is a no-op view;
    # other multiples of 4 would need an in-kernel reshape before the CE.
    assert h == NUM_CLASSES, "fused CE path supports h == 4 only"
    if wt is None:
        wt = jnp.ones((NUM_CLASSES,), jnp.float32)
    return _forward_with_loss(params, feature, labels, wt, h)


# ------------------------------ reference (pure JAX) -------------------------

def _reference(w1, b1, w2, b2, feature, labels, wt):
    hid = jnp.maximum(feature @ w1 + b1, 0.0)
    logits = hid @ w2 + b2
    r = logits.reshape(-1, NUM_CLASSES)
    m = jnp.max(r, axis=-1, keepdims=True)
    logp = r - m - jnp.log(jnp.sum(jnp.exp(r - m), axis=-1, keepdims=True))
    nll = -jnp.take_along_axis(logp, labels.reshape(-1, 1), axis=-1)[:, 0]
    w_i = wt[labels]
    loss = jnp.sum(w_i * nll) / jnp.sum(w_i)
    return loss, logits


# --------------------------------- main -------------------------------------

if __name__ == "__main__":
    key = jax.random.PRNGKey(0)
    k1, k2, k3, k4, k5, k6, k7 = jax.random.split(key, 7)

    B, H, IN, MID = 8, 4, 10, 100   # h = 4  ->  reshaped_logits == logits

    w1 = jax.random.normal(k1, (IN, MID), jnp.float32) * 0.1    # stored (in, out)
    b1 = jax.random.normal(k2, (MID,), jnp.float32) * 0.1
    w2 = jax.random.normal(k3, (MID, H), jnp.float32) * 0.1
    b2 = jax.random.normal(k4, (H,), jnp.float32) * 0.1
    params = prepare_params(w1, b1, w2, b2)                      # padded once at init

    feature = jax.random.normal(k5, (B, IN), jnp.float32)
    labels = jax.random.randint(k6, (B * H // 4,), 0, 4, jnp.int32)
    wt = jax.random.uniform(k7, (4,), jnp.float32, 0.5, 1.5)

    # with labels: (loss, logits) from one fused pallas_call
    loss, logits = model_forward(params, feature, labels=labels, wt=wt, h=H)
    jax.block_until_ready(loss)
    jax.block_until_ready(logits)

    # without labels: (0, logits)
    zero_loss, logits2 = model_forward(params, feature, h=H)
    jax.block_until_ready(logits2)

    # sanity check vs pure-JAX reference (loose tol: MXU f32 + approx reciprocal)
    ref_loss, ref_logits = _reference(w1, b1, w2, b2, feature, labels, wt)
    assert jnp.allclose(logits, ref_logits, rtol=1e-2, atol=1e-2)
    assert jnp.allclose(logits2, ref_logits, rtol=1e-2, atol=1e-2)
    assert jnp.allclose(loss, ref_loss, rtol=1e-2, atol=1e-2)

    print("KERNEL_OK")
</pallas_src>

<mosaic_0001>
module attributes {stable_mosaic.version = 11 : i64} {
  func.func @fused_mlp_ce_kernel(%arg0: memref<8x128xf32, #tpu.memory_space<vmem>>, %arg1: memref<128x128xf32, #tpu.memory_space<vmem>>, %arg2: memref<1x128xf32, #tpu.memory_space<vmem>>, %arg3: memref<128x128xf32, #tpu.memory_space<vmem>>, %arg4: memref<1x128xf32, #tpu.memory_space<vmem>>, %arg5: memref<8x128xi32, #tpu.memory_space<vmem>>, %arg6: memref<1x128xf32, #tpu.memory_space<vmem>>, %arg7: memref<8x128xf32, #tpu.memory_space<vmem>>, %arg8: memref<1x1xf32, #tpu.memory_space<smem>>) attributes {dimension_semantics = [], scalar_prefetch = 0 : i64, scratch_operands = 0 : i64, tpu.core_type = #tpu.core_type<tc>} {
    %c0 = arith.constant 0 : index
    %c0_0 = arith.constant 0 : index
    %0 = vector.load %arg0[%c0, %c0_0] : memref<8x128xf32, #tpu.memory_space<vmem>>, vector<8x128xf32>
    %c0_1 = arith.constant 0 : index
    %c0_2 = arith.constant 0 : index
    %1 = vector.load %arg1[%c0_1, %c0_2] : memref<128x128xf32, #tpu.memory_space<vmem>>, vector<128x128xf32>
    %cst = arith.constant dense<0.000000e+00> : vector<8x128xf32>
    %2 = tpu.matmul %0, %1, %cst {dimension_numbers = #tpu.dot_dimension_numbers<[1], [0], [0], [1], [0, 0, 1, 1], [], []>} : vector<8x128xf32>, vector<128x128xf32>, vector<8x128xf32> -> vector<8x128xf32>
    %c0_3 = arith.constant 0 : index
    %c0_4 = arith.constant 0 : index
    %3 = vector.load %arg2[%c0_3, %c0_4] : memref<1x128xf32, #tpu.memory_space<vmem>>, vector<1x128xf32>
    %4 = vector.broadcast %3 : vector<1x128xf32> to vector<8x128xf32>
    %5 = arith.addf %2, %4 : vector<8x128xf32>
    %cst_5 = arith.constant 0.000000e+00 : f32
    %6 = vector.broadcast %cst_5 : f32 to vector<8x128xf32>
    %7 = arith.maximumf %5, %6 : vector<8x128xf32>
    %c0_6 = arith.constant 0 : index
    %c0_7 = arith.constant 0 : index
    %8 = vector.load %arg3[%c0_6, %c0_7] : memref<128x128xf32, #tpu.memory_space<vmem>>, vector<128x128xf32>
    %cst_8 = arith.constant dense<0.000000e+00> : vector<8x128xf32>
    %9 = tpu.matmul %7, %8, %cst_8 {dimension_numbers = #tpu.dot_dimension_numbers<[1], [0], [0], [1], [0, 0, 1, 1], [], []>} : vector<8x128xf32>, vector<128x128xf32>, vector<8x128xf32> -> vector<8x128xf32>
    %c0_9 = arith.constant 0 : index
    %c0_10 = arith.constant 0 : index
    %10 = vector.load %arg4[%c0_9, %c0_10] : memref<1x128xf32, #tpu.memory_space<vmem>>, vector<1x128xf32>
    %11 = vector.broadcast %10 : vector<1x128xf32> to vector<8x128xf32>
    %12 = arith.addf %9, %11 : vector<8x128xf32>
    %c0_11 = arith.constant 0 : index
    %c0_12 = arith.constant 0 : index
    %13 = vector.load %arg7[%c0_11, %c0_12] : memref<8x128xf32, #tpu.memory_space<vmem>>, vector<8x128xf32>
    tpu.vector_store %arg7[%c0_11, %c0_12], %12 {strides = array<i32>} : memref<8x128xf32, #tpu.memory_space<vmem>>, vector<8x128xf32>,
    %14 = tpu.iota {dimensions = array<i32: 1>} : vector<8x128xi32>
    %c4_i32 = arith.constant 4 : i32
    %15 = vector.broadcast %c4_i32 : i32 to vector<8x128xi32>
    %16 = arith.cmpi slt, %14, %15 : vector<8x128xi32>
    %cst_13 = arith.constant -1.000000e+30 : f32
    %17 = vector.broadcast %cst_13 : f32 to vector<8x128xf32>
    %18 = arith.select %16, %12, %17 : vector<8x128xi1>, vector<8x128xf32>
    %cst_14 = arith.constant dense<0xFF800000> : vector<8xf32>
    %19 = vector.multi_reduction <maximumf>, %18, %cst_14 [1] : vector<8x128xf32> to vector<8xf32>
    %20 = vector.shape_cast %19 : vector<8xf32> to vector<8x1xf32>
    %21 = vector.broadcast %20 : vector<8x1xf32> to vector<8x128xf32>
    %22 = arith.subf %18, %21 : vector<8x128xf32>
    %23 = math.exp %22 : vector<8x128xf32>
    %cst_15 = arith.constant dense<0.000000e+00> : vector<8xf32>
    %24 = vector.multi_reduction <add>, %23, %cst_15 [1] : vector<8x128xf32> to vector<8xf32>
    %25 = vector.shape_cast %24 : vector<8xf32> to vector<8x1xf32>
    %26 = math.log %25 : vector<8x1xf32>
    %27 = vector.broadcast %26 : vector<8x1xf32> to vector<8x128xf32>
    %28 = arith.subf %22, %27 : vector<8x128xf32>
    %c0_16 = arith.constant 0 : index
    %c0_17 = arith.constant 0 : index
    %29 = vector.load %arg5[%c0_16, %c0_17] : memref<8x128xi32, #tpu.memory_space<vmem>>, vector<8x128xi32>
    %30 = arith.cmpi eq, %14, %29 : vector<8x128xi32>
    %31 = arith.extui %30 : vector<8x128xi1> to vector<8x128xi32>
    %32 = arith.sitofp %31 : vector<8x128xi32> to vector<8x128xf32>
    %33 = arith.mulf %28, %32 : vector<8x128xf32>
    %cst_18 = arith.constant dense<0.000000e+00> : vector<8xf32>
    %34 = vector.multi_reduction <add>, %33, %cst_18 [1] : vector<8x128xf32> to vector<8xf32>
    %35 = vector.shape_cast %34 : vector<8xf32> to vector<8x1xf32>
    %c0_19 = arith.constant 0 : index
    %c0_20 = arith.constant 0 : index
    %36 = vector.load %arg6[%c0_19, %c0_20] : memref<1x128xf32, #tpu.memory_space<vmem>>, vector<1x128xf32>
    %37 = vector.broadcast %36 : vector<1x128xf32> to vector<8x128xf32>
    %38 = arith.mulf %37, %32 : vector<8x128xf32>
    %cst_21 = arith.constant dense<0.000000e+00> : vector<8xf32>
    %39 = vector.multi_reduction <add>, %38, %cst_21 [1] : vector<8x128xf32> to vector<8xf32>
    %40 = vector.shape_cast %39 : vector<8xf32> to vector<8x1xf32>
    %cst_22 = arith.constant 0.000000e+00 : f32
    %41 = vector.broadcast %cst_22 : f32 to vector<8x1xf32>
    %42 = arith.subf %41, %35 : vector<8x1xf32>
    %43 = arith.mulf %42, %40 : vector<8x1xf32>
    %44 = vector.shape_cast %43 : vector<8x1xf32> to vector<1x8x1xf32>
    %cst_23 = arith.constant dense<0.000000e+00> : vector<1xf32>
    %45 = vector.multi_reduction <add>, %44, %cst_23 [1, 2] : vector<1x8x1xf32> to vector<1xf32>
    %46 = vector.shape_cast %45 : vector<1xf32> to vector<1x1x1xf32>
    %47 = vector.extract %46[0, 0, 0] : f32 from vector<1x1x1xf32>
    %48 = vector.broadcast %47 : f32 to vector<1x1xf32>
    %49 = vector.shape_cast %40 : vector<8x1xf32> to vector<1x8x1xf32>
    %cst_24 = arith.constant dense<0.000000e+00> : vector<1xf32>
    %50 = vector.multi_reduction <add>, %49, %cst_24 [1, 2] : vector<1x8x1xf32> to vector<1xf32>
    %51 = vector.shape_cast %50 : vector<1xf32> to vector<1x1x1xf32>
    %52 = vector.extract %51[0, 0, 0] : f32 from vector<1x1x1xf32>
    %53 = vector.broadcast %52 : f32 to vector<1x1xf32>
    %54 = tpu.reciprocal %53 {approx = true} : vector<1x1xf32> -> vector<1x1xf32>
    %55 = arith.mulf %53, %54 : vector<1x1xf32>
    %cst_25 = arith.constant 2.000000e+00 : f32
    %56 = vector.broadcast %cst_25 : f32 to vector<1x1xf32>
    %57 = arith.subf %56, %55 : vector<1x1xf32>
    %58 = arith.mulf %54, %57 : vector<1x1xf32>
    %59 = arith.mulf %48, %58 : vector<1x1xf32>
    %60 = vector.shape_cast %59 : vector<1x1xf32> to vector<1x1x1xf32>
    %cst_26 = arith.constant dense<0.000000e+00> : vector<1xf32>
    %61 = vector.multi_reduction <add>, %60, %cst_26 [1, 2] : vector<1x1x1xf32> to vector<1xf32>
    %62 = vector.shape_cast %61 : vector<1xf32> to vector<1x1x1xf32>
    %63 = vector.extract %62[0, 0, 0] : f32 from vector<1x1x1xf32>
    %c0_27 = arith.constant 0 : index
    %c0_28 = arith.constant 0 : index
    %64 = memref.load %arg8[%c0_27, %c0_28] : memref<1x1xf32, #tpu.memory_space<smem>>
    memref.store %63, %arg8[%c0_27, %c0_28] : memref<1x1xf32, #tpu.memory_space<smem>>
    return
  }
}

</mosaic_0001>

<bundles_post_ra>
// kernel: _forward_with_loss.1
= control target key start
LH: loop header
LB: loop body
LE: loop exit
PB: predicated region body
PF: predicated region fallthrough
CT: control target
= control target key end

     0   :  { %14 = vsyncpa [#allocation3], 0  ;;  %s393_s0 = inlined_call_operand.vmem [shape: f32[8,128], index: 0, kind: input, shape index: {}]   ;;  %s394_s1 = inlined_call_operand.hbm [shape: f32[128,128], index: 1, kind: input, shape index: {}]   ;;  %s395_s2 = inlined_call_operand.vmem [shape: f32[1,128], index: 2, kind: input, shape index: {}]   ;;  %s396_s3 = inlined_call_operand.hbm [shape: f32[128,128], index: 3, kind: input, shape index: {}]   ;;  %s397_s4 = inlined_call_operand.vmem [shape: f32[1,128], index: 4, kind: input, shape index: {}]   ;;  %s398_s5 = inlined_call_operand.vmem [shape: s32[8,128], index: 5, kind: input, shape index: {}]   ;;  %s399_s6 = inlined_call_operand.vmem [shape: f32[1,128], index: 6, kind: input, shape index: {}]   ;;  %s400_s7 = inlined_call_operand.vmem [shape: f32[8,128], index: 7, kind: output, shape index: {0}]   ;;  %s401_s8 = inlined_call_operand.hbm [shape: f32[1,1], index: 8, kind: output, shape index: {1}]  }
   0x1   :  { %15 = vsyncpa [#allocation6], 0 }
   0x2   :  { %16 = vsyncpa [#allocation4], 0  ;;  %s23_s29 = sshll.u32 %s394_s1, 4  ;;  %s315_s30 = smov [#allocation2]   ;;  %s24_s29 = int_to_ptr.hbm [resolvable:$true] %s23_s29 }
   0x3   :  { %s25_s9 = sshll.u32 %s315_s30, 4  ;;  %s38_s12 = sshll.u32 %s396_s3, 4  ;;  %s26_s9 = int_to_ptr.vmem [resolvable:$true] %s25_s9  ;;  %s39_s12 = int_to_ptr.hbm [resolvable:$true] %s38_s12 }
   0x4   :  { %s316_s13 = smov 128   ;;  %s317_s14 = smov 8  }
   0x5   :  { %31 = dma.hbm_to_vmem [thread:$0]  %s24_s29, 2048, %s26_s9, [#allocation3], %s316_s13, %s316_s13, %s317_s14  }
   0x6   :  { %s318_s15 = smov [#allocation5]  }
   0x7   :  { %s40_s16 = sshll.u32 %s318_s15, 4  ;;  %s41_s16 = int_to_ptr.vmem [resolvable:$true] %s40_s16 }
   0x8   :  { %46 = dma.hbm_to_vmem [thread:$0]  %s39_s12, 2048, %s41_s16, [#allocation6], %s316_s13, %s316_s13, %s317_s14  }
   0x9   :  { %309 = dma.done.wait [#allocation3], 2048  }
   0xa   :  { %310 = vsyncadd [#allocation3], 4294965248 }
   0xb   :  { %311 = dma.done.wait [#allocation6], 2048  }
   0xc   :  { %312 = vsyncadd [#allocation6], 4294965248  ;;  %v77_v0 = vld [vmem:[#allocation2 + $0x78] sm:$0xff]  ;;  %v76_v1 = vld [vmem:[#allocation2 + $0x70] sm:$0xff]  ;;  %v144_v37 = vlaneseq  ;;  %v319_v51 = vmov 0.0   ;;  %vm174_vm2 = vcmask 7168  }
   0xd   :  { %82 = vmatpush.msra.mxu0 %v77_v0  ;;  %v75_v2 = vld [vmem:[#allocation2 + $0x68] sm:$0xff]  ;;  %v74_v3 = vld [vmem:[#allocation2 + $0x60] sm:$0xff]  ;;  %v118_v4 = vld [vmem:[#allocation5 + $0x78] sm:$0xff]  ;;  %s213_s25 = sshll.u32 %s401_s8, 4  ;;  %s320_s27 = smov [#allocation7]   ;;  %s214_s25 = int_to_ptr.hbm [resolvable:$true] %s213_s25 }
   0xe   :  { %v73_v5 = vld [vmem:[#allocation2 + $0x58] sm:$0xff]  ;;  %123 = vmatpush.msra.mxu1 %v118_v4  ;;  %v117_v6 = vld [vmem:[#allocation5 + $0x70] sm:$0xff]  ;;  %v116_v7 = vld [vmem:[#allocation5 + $0x68] sm:$0xff]  ;;  %v145_v38 = vand.u32 127, %v144_v37 }
   0xf   :  { %83 = vmatpush.msra.mxu0 %v76_v1  ;;  %v72_v8 = vld [vmem:[#allocation2 + $0x50] sm:$0xff]  ;;  %v115_v9 = vld [vmem:[#allocation5 + $0x60] sm:$0xff]  ;;  %v71_v10 = vld [vmem:[#allocation2 + $0x48] sm:$0xff] }
  0x10   :  { %124 = vmatpush.msra.mxu1 %v117_v6  ;;  %v114_v11 = vld [vmem:[#allocation5 + $0x58] sm:$0xff]  ;;  %v70_v12 = vld [vmem:[#allocation2 + $0x40] sm:$0xff]  ;;  %v113_v13 = vld [vmem:[#allocation5 + $0x50] sm:$0xff]  ;;  %vm146_vm0 = vcmp.lt.s32.totalorder %v145_v38, 4 }
  0x11   :  { %84 = vmatpush.msra.mxu0 %v75_v2  ;;  %v69_v14 = vld [vmem:[#allocation2 + $0x38] sm:$0xff]  ;;  %v112_v15 = vld [vmem:[#allocation5 + $0x48] sm:$0xff]  ;;  %v68_v16 = vld [vmem:[#allocation2 + $0x30] sm:$0xff] }
  0x12   :  { %125 = vmatpush.msra.mxu1 %v116_v7  ;;  %v111_v17 = vld [vmem:[#allocation5 + $0x40] sm:$0xff]  ;;  %v67_v18 = vld [vmem:[#allocation2 + $0x28] sm:$0xff]  ;;  %v110_v19 = vld [vmem:[#allocation5 + $0x38] sm:$0xff] }
  0x13   :  { %85 = vmatpush.msra.mxu0 %v74_v3  ;;  %v66_v20 = vld [vmem:[#allocation2 + $0x20] sm:$0xff]  ;;  %v109_v21 = vld [vmem:[#allocation5 + $0x30] sm:$0xff]  ;;  %v65_v22 = vld [vmem:[#allocation2 + $0x18] sm:$0xff] }
  0x14   :  { %126 = vmatpush.msra.mxu1 %v115_v9  ;;  %v108_v23 = vld [vmem:[#allocation5 + $0x28] sm:$0xff]  ;;  %v64_v24 = vld [vmem:[#allocation2 + $0x10] sm:$0xff]  ;;  %v107_v25 = vld [vmem:[#allocation5 + $0x20] sm:$0xff] }
  0x15   :  { %86 = vmatpush.msra.mxu0 %v73_v5  ;;  %v63_v26 = vld [vmem:[#allocation2 + $0x8] sm:$0xff]  ;;  %v106_v27 = vld [vmem:[#allocation5 + $0x18] sm:$0xff]  ;;  %v62_v28 = vld [vmem:[#allocation2] sm:$0xff] }
  0x16   :  { %127 = vmatpush.msra.mxu1 %v114_v11  ;;  %v61_v29 = vld [vmem:[%s393_s0] sm:$0xff]  ;;  %v105_v30 = vld [vmem:[#allocation5 + $0x10] sm:$0xff]  ;;  %v104_v31 = vld [vmem:[#allocation5 + $0x8] sm:$0xff] }
  0x17   :  { %87 = vmatpush.msra.mxu0 %v72_v8  ;;  %v103_v32 = vld [vmem:[#allocation5] sm:$0xff] }
  0x18   :  { %128 = vmatpush.msra.mxu1 %v113_v13  ;;  %v240_v33 = vld [vmem:[%s395_s2] ss:$0 sm:$0xff] }
  0x19   :  { %88 = vmatpush.msra.mxu0 %v71_v10  ;;  %v241_v39 = vld [vmem:[%s397_s4] ss:$0 sm:$0xff] }
  0x1a   :  { %129 = vmatpush.msra.mxu1 %v112_v15  ;;  %v158_v48 = vld [vmem:[%s398_s5] sm:$0xff] }
  0x1b   :  { %89 = vmatpush.msra.mxu0 %v70_v12  ;;  %vm159_vm1 = vcmp.eq.s32.totalorder %v145_v38, %v158_v48  ;;  %v242_v55 = vld [vmem:[%s399_s6] ss:$0 sm:$0xff] }
  0x1c   :  { %130 = vmatpush.msra.mxu1 %v111_v17  ;;  %v227_v52 = vsel %vm159_vm1, 1.0, %v319_v51 }
  0x1d   :  { %90 = vmatpush.msra.mxu0 %v69_v14  ;;  %v169_v56 = vmul.f32 %v242_v55, %v227_v52 }
  0x1e   :  { %131 = vmatpush.msra.mxu1 %v110_v19 }
  0x1f   :  { %91 = vmatpush.msra.mxu0 %v68_v16 }
  0x20   :  { %132 = vmatpush.msra.mxu1 %v109_v21 }
  0x21   :  { %92 = vmatpush.msra.mxu0 %v67_v18 }
  0x22   :  { %133 = vmatpush.msra.mxu1 %v108_v23 }
  0x23   :  { %93 = vmatpush.msra.mxu0 %v66_v20 }
  0x24   :  { %134 = vmatpush.msra.mxu1 %v107_v25 }
  0x25   :  { %94 = vmatpush.msra.mxu0 %v65_v22 }
  0x26   :  { %135 = vmatpush.msra.mxu1 %v106_v27 }
  0x27   :  { %95 = vmatpush.msra.mxu0 %v64_v24 }
  0x28   :  { %136 = vmatpush.msra.mxu1 %v105_v30 }
  0x29   :  { %96 = vmatpush.msra.mxu0 %v63_v26 }
  0x2a   :  { %137 = vmatpush.msra.mxu1 %v104_v31 }
  0x2b   :  { %97 = vmatpush.msra.mxu0 %v62_v28 }
  0x2c   :  { %98 = vmatmul.f32.vlgmr.msra.gmra.mxu0 %v61_v29  ;;  %138 = vmatpush.msra.mxu1 %v103_v32 }
  0xa9   :  { %v99_v34 = vpop.f32.mrf.mxu0 }
  0xaa   :  { %v100_v35 = vadd.f32 %v240_v33, %v99_v34 }
  0xac   :  { %v102_v36 = vmax.f32 %v100_v35, 0.0 }
  0xae   :  { %139 = vmatmul.f32.vlgmr.msra.gmra.mxu1 %v102_v36 }
 0x12b   :  { %v140_v40 = vpop.f32.mrf.mxu1 }
 0x12c   :  { %v141_v41 = vadd.f32 %v241_v39, %v140_v40 }
 0x12e   :  { %143 = vst [vmem:[%s400_s7] sm:$0xff] %v141_v41  ;;  %v147_v42 = vsel %vm146_vm0, %v141_v41, -1e+30 }
 0x12f   :  { %148 = vmax.xlane.f32.xlu0 %v147_v42 }
 0x1a2   :  { %v149_v43 = vpop.xlane.xlu0 %148 }
 0x1a3   :  { %v150_v44 = vsub.f32 %v147_v42, %v149_v43 }
 0x1a5   :  { %v151_v45 = vmul.f32 1.442695, %v150_v44 }
 0x1a7   :  { %243 = vpow2.f32 %v151_v45 }
 0x1ad   :  { %v244_v46 = vpop.eup %243 }
 0x1ae   :  { %153 = vadd.xlane.f32.xlu0 %v244_v46 }
 0x221   :  { %v154_v47 = vpop.xlane.xlu0 %153 }
 0x222   :  { %245 = vlog2.f32 %v154_v47 }
 0x228   :  { %v246_v49 = vpop.eup %245 }
 0x229   :  { %v156_v50 = vmul.f32 0.6931472, %v246_v49 }
 0x22b   :  { %v157_v53 = vsub.f32 %v150_v44, %v156_v50 }
 0x22d   :  { %v162_v54 = vmul.f32 %v227_v52, %v157_v53 }
 0x22f   :  { %163 = vadd.xlane.f32.xlu1 %v162_v54 }
 0x237   :  { %170 = vadd.xlane.f32.xlu1 %v169_v56 }
 0x2a2   :  { %v164_v57 = vpop.xlane.xlu1 %163 }
 0x2a3   :  { %v172_v58 = vsub.f32 0.0, %v164_v57 }
 0x2aa   :  { %v171_v59 = vpop.xlane.xlu1 %170 }
 0x2ab   :  { %v173_v60 = vmul.f32 %v172_v58, %v171_v59  ;;  %v186_v62 = vsel %vm174_vm2, %v171_v59, 0.0 }
 0x2ad   :  { %v175_v61 = vsel %vm174_vm2, %v173_v60, 0.0 }
 0x2ae   :  { %176 = vadd.xlane.f32.xlu2 %v175_v61 }
 0x2b6   :  { %187 = vadd.xlane.f32.xlu2 %v186_v62 }
 0x321   :  { %v177_v63 = vpop.xlane.xlu2 %176 }
 0x322   :  { %v178_v0 = vrot.slane %v177_v63, 4 }
 0x324   :  { %v179_v1 = vadd.f32 %v178_v0, %v177_v63 }
 0x326   :  { %v180_v2 = vrot.slane %v179_v1, 2 }
 0x328   :  { %v181_v3 = vadd.f32 %v180_v2, %v179_v1 }
 0x329   :  { %v188_v4 = vpop.xlane.xlu2 %187 }
 0x32a   :  { %v189_v5 = vrot.slane %v188_v4, 4  ;;  %v182_v6 = vrot.slane %v181_v3, 1 }
 0x32c   :  { %v190_v7 = vadd.f32 %v189_v5, %v188_v4  ;;  %v183_v8 = vadd.f32 %v182_v6, %v181_v3 }
 0x32e   :  { %v191_v9 = vrot.slane %v190_v7, 2  ;;  %228 = vpush %v183_v8 }
 0x330   :  { %v192_v10 = vadd.f32 %v191_v9, %v190_v7 }
 0x332   :  { %v193_v11 = vrot.slane %v192_v10, 1 }
 0x334   :  { %v194_v12 = vadd.f32 %v193_v11, %v192_v10 }
 0x336   :  { %230 = vpush %v194_v12 }
 0x35f   :  { %s229_s5 = spop %228 }
 0x360   :  { %v185_v18 = vstv %s229_s5 }
 0x367   :  { %s231_s6 = spop %230 }
 0x368   :  { %v196_v13 = vstv %s231_s6 }
 0x369   :  { %247 = vrcp.f32 %v196_v13 }
 0x36f   :  { %v248_v14 = vpop.eup %247 }
 0x370   :  { %v198_v15 = vmul.f32 %v248_v14, %v196_v13 }
 0x372   :  { %v199_v16 = vsub.f32 2.0, %v198_v15 }
 0x374   :  { %v200_v17 = vmul.f32 %v248_v14, %v199_v16 }
 0x376   :  { %v201_v19 = vmul.f32 %v200_v17, %v185_v18 }
 0x378   :  { %232 = vpush %v201_v19 }
 0x3a9   :  { %s233_s26 = spop %232 }
 0x3aa   :  { %205 = sst [smem:[#allocation7]] %s233_s26 }
 0x3ab   :  { %216 = dma.smem_to_hbm %s320_s27, 16, %s214_s25, [#allocation4]  }
 0x3ac   :  { %313 = dma.done.wait [#allocation4], 16  }
 0x3ad   :  { %314 = vsyncadd [#allocation4], 4294967280 }
 0x3ae   :  { %223 = sfence }
 0x3af   :  { %224 = vsyncpa [#allocation3], 1 }
 0x3b0   :  { %225 = vsyncpa [#allocation6], 1 }
 0x3b1   :  { %226 = vsyncpa [#allocation4], 1 }

</bundles_post_ra>
